<compile_context>
chip_gen: v7x
topology: tpu7x:2x2x1
jax: 0.10.0
libtpu: 0.0.40
codegen_flags: <defaults>
</compile_context>

<pallas_src>
import jax
import jax.numpy as jnp
from jax.experimental import pallas as pl
from jax.experimental.pallas import tpu as pltpu

DROP_P = 0.1
LANE = 128        # output last dim padded to a multiple of this (lane-dense stores)
SUBLANE = 8       # batch tiles kept a multiple of this
TB_MAX = 1024     # big batch tiles amortize the ~0.35 us per-grid-step overhead
_INV_KEEP = 1.0 / (1.0 - DROP_P)
# keep iff (int32 random bits) >= this threshold  =>  P(keep) = 1 - DROP_P
_KEEP_T_I32 = int(round(DROP_P * (1 << 32))) - (1 << 31)

_PRNG_SUPPORTED = [None]   # cache: does pltpu.prng_* lower on this backend?

_CPARAMS = pltpu.CompilerParams(dimension_semantics=("parallel",))
# NOTE: W and bias are grid-invariant; single-buffering them
# (pipeline_mode=pl.Buffered(1)) would halve their VMEM footprint, left at the
# default here for maximum portability.
# TODO(synk): for large D*C_pad (v7x has only 64 MiB VMEM) add K/N grid axes
# ("arbitrary") with an f32 VMEM accumulator instead of one resident W block.


def _round_up(n, m):
    return ((n + m - 1) // m) * m


# ---------------------------------------------------------------------------
# kernels
# ---------------------------------------------------------------------------
def _make_prng_dropout_kernel(compute_dtype, emit_mask=False):
    """Dropout(p) + Linear with the keep-mask generated by the HW PRNG."""

    def kernel(seed_ref, x_ref, w_ref, b_ref, o_ref, *mask_out):
        # Independent, reproducible stream per batch tile.
        pltpu.prng_seed(seed_ref[0] + pl.program_id(0))
        raw = pltpu.prng_random_bits(x_ref.shape)
        bits = raw if raw.dtype == jnp.int32 else pltpu.bitcast(raw, jnp.int32)
        keep = bits >= jnp.int32(_KEEP_T_I32)
        # Mask-apply (and the 1/(1-p) scale) in f32: v5e has no bf16 VPU path
        # and this keeps exact parity with the f32 reference.
        x_f32 = x_ref[...].astype(jnp.float32)
        x_drop = jnp.where(keep, x_f32 * jnp.float32(_INV_KEEP), jnp.float32(0.0))
        acc = jnp.dot(x_drop.astype(compute_dtype), w_ref[...],
                      preferred_element_type=jnp.float32)      # MXU, f32 accumulate
        o_ref[...] = acc + b_ref[...]
        if emit_mask:                                           # verification only
            mask_out[0][...] = keep.astype(jnp.float32)

    return kernel


def _make_mask_dropout_kernel(compute_dtype):
    """Fallback: Dropout(p) + Linear with a streamed bf16 {0,1} keep-mask."""

    def kernel(x_ref, m_ref, w_ref, b_ref, o_ref):
        x_f32 = x_ref[...].astype(jnp.float32)
        keep = m_ref[...].astype(jnp.float32)
        x_drop = x_f32 * (keep * jnp.float32(_INV_KEEP))
        acc = jnp.dot(x_drop.astype(compute_dtype), w_ref[...],
                      preferred_element_type=jnp.float32)
        o_ref[...] = acc + b_ref[...]

    return kernel


def _make_linear_kernel(compute_dtype):
    """Eval path: plain Linear, no mask stream, no mask multiply."""

    def kernel(x_ref, w_ref, b_ref, o_ref):
        acc = jnp.dot(x_ref[...].astype(compute_dtype), w_ref[...],
                      preferred_element_type=jnp.float32)
        o_ref[...] = acc + b_ref[...]

    return kernel


# ---------------------------------------------------------------------------
# pallas_call builders
# ---------------------------------------------------------------------------
def _common_specs(TB, D, C_pad, with_prefetch):
    if with_prefetch:   # index_maps receive the scalar-prefetch ref as a trailing arg
        x_spec = pl.BlockSpec((TB, D), lambda i, s: (i, 0))
        w_spec = pl.BlockSpec((D, C_pad), lambda i, s: (0, 0))
        b_spec = pl.BlockSpec((1, C_pad), lambda i, s: (0, 0))
        o_spec = pl.BlockSpec((TB, C_pad), lambda i, s: (i, 0))
    else:
        x_spec = pl.BlockSpec((TB, D), lambda i: (i, 0))
        w_spec = pl.BlockSpec((D, C_pad), lambda i: (0, 0))
        b_spec = pl.BlockSpec((1, C_pad), lambda i: (0, 0))
        o_spec = pl.BlockSpec((TB, C_pad), lambda i: (i, 0))
    return x_spec, w_spec, b_spec, o_spec


def _prng_dropout_call(x_c, w_p, b_p, seed, TB, num_tiles, compute_dtype, emit_mask):
    B, D = x_c.shape
    C_pad = w_p.shape[1]
    x_spec, w_spec, b_spec, o_spec = _common_specs(TB, D, C_pad, with_prefetch=True)
    out_specs = o_spec
    out_shape = jax.ShapeDtypeStruct((B, C_pad), jnp.float32)
    if emit_mask:
        out_specs = (o_spec, pl.BlockSpec((TB, D), lambda i, s: (i, 0)))
        out_shape = (out_shape, jax.ShapeDtypeStruct((B, D), jnp.float32))
    grid_spec = pltpu.PrefetchScalarGridSpec(
        num_scalar_prefetch=1,
        grid=(num_tiles,),
        in_specs=[x_spec, w_spec, b_spec],
        out_specs=out_specs,
    )
    seeds = jnp.asarray([seed], dtype=jnp.int32)
    return pl.pallas_call(
        _make_prng_dropout_kernel(compute_dtype, emit_mask),
        out_shape=out_shape,
        grid_spec=grid_spec,
        compiler_params=_CPARAMS,
    )(seeds, x_c, w_p, b_p)


def _mask_dropout_call(x_c, keep_bf16, w_p, b_p, TB, num_tiles, compute_dtype):
    B, D = x_c.shape
    C_pad = w_p.shape[1]
    x_spec, w_spec, b_spec, o_spec = _common_specs(TB, D, C_pad, with_prefetch=False)
    m_spec = pl.BlockSpec((TB, D), lambda i: (i, 0))
    return pl.pallas_call(
        _make_mask_dropout_kernel(compute_dtype),
        out_shape=jax.ShapeDtypeStruct((B, C_pad), jnp.float32),
        grid=(num_tiles,),
        in_specs=[x_spec, m_spec, w_spec, b_spec],
        out_specs=o_spec,
        compiler_params=_CPARAMS,
    )(x_c, keep_bf16, w_p, b_p)


def _linear_call(x_c, w_p, b_p, TB, num_tiles, compute_dtype):
    B, D = x_c.shape
    C_pad = w_p.shape[1]
    x_spec, w_spec, b_spec, o_spec = _common_specs(TB, D, C_pad, with_prefetch=False)
    return pl.pallas_call(
        _make_linear_kernel(compute_dtype),
        out_shape=jax.ShapeDtypeStruct((B, C_pad), jnp.float32),
        grid=(num_tiles,),
        in_specs=[x_spec, w_spec, b_spec],
        out_specs=o_spec,
        compiler_params=_CPARAMS,
    )(x_c, w_p, b_p)


# ---------------------------------------------------------------------------
# wrapper
# ---------------------------------------------------------------------------
def neural_net_forward(x, w, b, *, training=True, seed=0, compute_dtype=None,
                       use_pallas=None, return_mask=False):
    """out = Linear(Dropout_{p=0.1}(x)).  x:[B,D], w:[D,C], b:[C] -> [B,C] f32.

    compute_dtype: dtype streamed to / multiplied on the MXU (jnp.bfloat16
      recommended on v6e/v7x; default = x.dtype for exact f32 parity).
    use_pallas: None = auto (small, launch-overhead-dominated problems use
      plain XLA); True/False forces the path.
    return_mask: also return the f32 {0,1} keep-mask actually used (training).
    Call eagerly (the in-kernel-PRNG probe blocks on its first result).
    """
    B0, D = x.shape
    C = w.shape[1]
    if compute_dtype is None:
        compute_dtype = x.dtype

    if use_pallas is None:
        use_pallas = (B0 * D >= (1 << 18)) or (D * C >= (1 << 18))

    inv_keep = jnp.float32(_INV_KEEP)

    if not use_pallas:
        # Demo-sized problems: a single grid step of real work, so pallas_call
        # fixed overhead dominates -- plain XLA is faster.
        if training:
            keep = jax.random.bernoulli(jax.random.PRNGKey(seed), 1.0 - DROP_P, (B0, D))
            mask = keep.astype(jnp.float32)
            out = (x * mask * inv_keep) @ w + b
            return (out, mask) if return_mask else out
        out = x @ w + b
        return (out, None) if return_mask else out

    # ------------------------------ Pallas path ------------------------------
    # Batch only needs sublane (8) alignment: at most 7 pad rows, and only if
    # misaligned.  No full zero-padded copy of x; a partial last tile's
    # out-of-bounds rows produce garbage output rows that are never written.
    if B0 % SUBLANE:
        x = jnp.pad(x, ((0, _round_up(B0, SUBLANE) - B0), (0, 0)))
    B = x.shape[0]

    C_pad = _round_up(C, LANE)                          # lane-dense output stores
    TB = min(TB_MAX, _round_up(B, SUBLANE))
    num_tiles = pl.cdiv(B, TB)

    x_c = x.astype(compute_dtype)                       # bf16 halves the dominant stream
    w_p = jnp.zeros((D, C_pad), compute_dtype).at[:, :C].set(w.astype(compute_dtype))
    b_p = jnp.zeros((1, C_pad), jnp.float32).at[0, :C].set(b.astype(jnp.float32))
    # NOTE: at TB<=1024 the tiles stay far below the default scoped-VMEM limits
    # (16 MiB v5e / 32 MiB v6e,v7x) for moderate D; pass vmem_limit_bytes via
    # CompilerParams if larger D / TB ever trips it.

    if not training:
        out = _linear_call(x_c, w_p, b_p, TB, num_tiles, compute_dtype)[:B0, :C]
        return (out, None) if return_mask else out

    out, mask = None, None
    if _PRNG_SUPPORTED[0] is not False:
        try:
            res = _prng_dropout_call(x_c, w_p, b_p, seed, TB, num_tiles,
                                     compute_dtype, emit_mask=return_mask)
            res = jax.block_until_ready(res)
            _PRNG_SUPPORTED[0] = True
            if return_mask:
                out, mask = res
            else:
                out = res
        except Exception:
            # pltpu.prng_* not lowerable on this backend: fall back to a
            # streamed bf16 {0,1} mask (still half the bytes of an f32 mask).
            _PRNG_SUPPORTED[0] = False
            out, mask = None, None
    if out is None:
        keep = jax.random.bernoulli(jax.random.PRNGKey(seed), 1.0 - DROP_P, (B, D))
        out = _mask_dropout_call(x_c, keep.astype(jnp.bfloat16), w_p, b_p,
                                 TB, num_tiles, compute_dtype)
        mask = keep.astype(jnp.float32)

    out = out[:B0, :C]
    if return_mask:
        return out, mask[:B0]
    return out


if __name__ == "__main__":
    batch = 8
    input_size = 32
    num_classes = 16

    root = jax.random.PRNGKey(0)
    kx, kw, kb = jax.random.split(root, 3)

    x = jax.random.normal(kx, (batch, input_size), dtype=jnp.float32)
    bound = 1.0 / (input_size ** 0.5)                   # PyTorch Linear init range
    w = jax.random.uniform(kw, (input_size, num_classes), jnp.float32,
                           minval=-bound, maxval=bound)
    b = jax.random.uniform(kb, (num_classes,), jnp.float32,
                           minval=-bound, maxval=bound)

    # 1) training path, f32, Pallas kernel forced on even at demo size.
    out_tr, mask = neural_net_forward(x, w, b, training=True, seed=42,
                                      use_pallas=True, return_mask=True)
    jax.block_until_ready(out_tr)
    assert out_tr.shape == (batch, num_classes)
    assert bool(jnp.all((mask == 0.0) | (mask == 1.0)))
    ref_tr = (x * mask / (1.0 - DROP_P)) @ w + b
    assert jnp.allclose(out_tr, ref_tr, atol=1e-4, rtol=1e-4), \
        float(jnp.max(jnp.abs(out_tr - ref_tr)))

    # Lean (single-output) training kernel agrees with the debug variant.
    out_lean = neural_net_forward(x, w, b, training=True, seed=42, use_pallas=True)
    jax.block_until_ready(out_lean)
    assert jnp.allclose(out_lean, out_tr, atol=1e-5, rtol=1e-5)

    # 2) eval path (model.eval()): no dropout, mask-free kernel.
    out_ev = neural_net_forward(x, w, b, training=False, use_pallas=True)
    jax.block_until_ready(out_ev)
    assert jnp.allclose(out_ev, x @ w + b, atol=1e-4, rtol=1e-4)

    # 3) bf16 matmul operands (v6e/v7x-recommended config); mask-apply stays
    #    f32, so only bf16 rounding of x/W separates it from the f32 reference.
    out_bf, mask_bf = neural_net_forward(x, w, b, training=True, seed=7,
                                         compute_dtype=jnp.bfloat16,
                                         use_pallas=True, return_mask=True)
    jax.block_until_ready(out_bf)
    ref_bf = (x * mask_bf / (1.0 - DROP_P)) @ w + b
    assert jnp.allclose(out_bf, ref_bf, atol=5e-2, rtol=5e-2)

    print("KERNEL_OK")
</pallas_src>

<mosaic_0001>
module attributes {stable_mosaic.version = 11 : i64} {
  func.func @kernel(%arg0: i32, %arg1: memref<1xi32, #tpu.memory_space<smem>>, %arg2: memref<8x32xf32, #tpu.memory_space<vmem>>, %arg3: memref<32x128xf32, #tpu.memory_space<vmem>>, %arg4: memref<1x128xf32, #tpu.memory_space<vmem>>, %arg5: memref<8x128xf32, #tpu.memory_space<vmem>>, %arg6: memref<8x32xf32, #tpu.memory_space<vmem>>) attributes {dimension_semantics = [#tpu.dimension_semantics<parallel>], iteration_bounds = array<i64: 1>, scalar_prefetch = 1 : i64, scratch_operands = 0 : i64, tpu.core_type = #tpu.core_type<tc>, window_params = [{transform_indices = @transform_0, window_bounds = array<i64: 8, 32>}, {pipeline_mode = #tpu.pipeline_mode<synchronous>, transform_indices = @transform_1, window_bounds = array<i64: 32, 128>}, {pipeline_mode = #tpu.pipeline_mode<synchronous>, transform_indices = @transform_2, window_bounds = array<i64: 1, 128>}, {transform_indices = @transform_3, window_bounds = array<i64: 8, 128>}, {transform_indices = @transform_4, window_bounds = array<i64: 8, 32>}]} {
    %c0 = arith.constant 0 : index
    %0 = memref.load %arg1[%c0] : memref<1xi32, #tpu.memory_space<smem>>
    %1 = arith.addi %0, %arg0 : i32
    "tpu.prng_set_seed_32"(%1) : (i32) -> ()
    %2 = "tpu.prng_random_bits"() : () -> vector<8x32xi32>
    %c-1717986918_i32 = arith.constant -1717986918 : i32
    %3 = vector.broadcast %c-1717986918_i32 : i32 to vector<8x32xi32>
    %4 = arith.cmpi sge, %2, %3 : vector<8x32xi32>
    %c0_0 = arith.constant 0 : index
    %c0_1 = arith.constant 0 : index
    %5 = vector.load %arg2[%c0_0, %c0_1] : memref<8x32xf32, #tpu.memory_space<vmem>>, vector<8x32xf32>
    %cst = arith.constant 1.11111116 : f32
    %6 = vector.broadcast %cst : f32 to vector<8x32xf32>
    %7 = arith.mulf %5, %6 : vector<8x32xf32>
    %cst_2 = arith.constant 0.000000e+00 : f32
    %8 = vector.broadcast %cst_2 : f32 to vector<8x32xf32>
    %9 = arith.select %4, %7, %8 : vector<8x32xi1>, vector<8x32xf32>
    %c0_3 = arith.constant 0 : index
    %c0_4 = arith.constant 0 : index
    %10 = vector.load %arg3[%c0_3, %c0_4] : memref<32x128xf32, #tpu.memory_space<vmem>>, vector<32x128xf32>
    %cst_5 = arith.constant dense<0.000000e+00> : vector<8x128xf32>
    %11 = tpu.matmul %9, %10, %cst_5 {dimension_numbers = #tpu.dot_dimension_numbers<[1], [0], [0], [1], [0, 0, 1, 1], [], []>} : vector<8x32xf32>, vector<32x128xf32>, vector<8x128xf32> -> vector<8x128xf32>
    %c0_6 = arith.constant 0 : index
    %c0_7 = arith.constant 0 : index
    %12 = vector.load %arg4[%c0_6, %c0_7] : memref<1x128xf32, #tpu.memory_space<vmem>>, vector<1x128xf32>
    %13 = vector.broadcast %12 : vector<1x128xf32> to vector<8x128xf32>
    %14 = arith.addf %11, %13 : vector<8x128xf32>
    %c0_8 = arith.constant 0 : index
    %c0_9 = arith.constant 0 : index
    %15 = vector.load %arg5[%c0_8, %c0_9] : memref<8x128xf32, #tpu.memory_space<vmem>>, vector<8x128xf32>
    tpu.vector_store %arg5[%c0_8, %c0_9], %14 {strides = array<i32>} : memref<8x128xf32, #tpu.memory_space<vmem>>, vector<8x128xf32>,
    %16 = arith.extui %4 : vector<8x32xi1> to vector<8x32xi32>
    %17 = arith.sitofp %16 : vector<8x32xi32> to vector<8x32xf32>
    %c0_10 = arith.constant 0 : index
    %c0_11 = arith.constant 0 : index
    %18 = vector.load %arg6[%c0_10, %c0_11] : memref<8x32xf32, #tpu.memory_space<vmem>>, vector<8x32xf32>
    tpu.vector_store %arg6[%c0_10, %c0_11], %17 {strides = array<i32>} : memref<8x32xf32, #tpu.memory_space<vmem>>, vector<8x32xf32>,
    return
  }
  func.func @transform_0(%arg0: i32, %arg1: memref<1xi32, #tpu.memory_space<smem>>) -> (i32, i32) {
    %c0_i32 = arith.constant 0 : i32
    %c0_i32_0 = arith.constant 0 : i32
    return %arg0, %c0_i32 : i32, i32
  }
  func.func @transform_1(%arg0: i32, %arg1: memref<1xi32, #tpu.memory_space<smem>>) -> (i32, i32) {
    %c0_i32 = arith.constant 0 : i32
    %c0_i32_0 = arith.constant 0 : i32
    %c0_i32_1 = arith.constant 0 : i32
    return %c0_i32, %c0_i32_0 : i32, i32
  }
  func.func @transform_2(%arg0: i32, %arg1: memref<1xi32, #tpu.memory_space<smem>>) -> (i32, i32) {
    %c0_i32 = arith.constant 0 : i32
    %c0_i32_0 = arith.constant 0 : i32
    %c0_i32_1 = arith.constant 0 : i32
    return %c0_i32, %c0_i32_0 : i32, i32
  }
  func.func @transform_3(%arg0: i32, %arg1: memref<1xi32, #tpu.memory_space<smem>>) -> (i32, i32) {
    %c0_i32 = arith.constant 0 : i32
    %c0_i32_0 = arith.constant 0 : i32
    return %arg0, %c0_i32 : i32, i32
  }
  func.func @transform_4(%arg0: i32, %arg1: memref<1xi32, #tpu.memory_space<smem>>) -> (i32, i32) {
    %c0_i32 = arith.constant 0 : i32
    %c0_i32_0 = arith.constant 0 : i32
    return %arg0, %c0_i32 : i32, i32
  }
}

module attributes {stable_mosaic.version = 11 : i64} {
  func.func @kernel(%arg0: i32, %arg1: memref<8x32xf32, #tpu.memory_space<vmem>>, %arg2: memref<8x32xbf16, #tpu.memory_space<vmem>>, %arg3: memref<32x128xf32, #tpu.memory_space<vmem>>, %arg4: memref<1x128xf32, #tpu.memory_space<vmem>>, %arg5: memref<8x128xf32, #tpu.memory_space<vmem>>) attributes {dimension_semantics = [#tpu.dimension_semantics<parallel>], iteration_bounds = array<i64: 1>, scalar_prefetch = 0 : i64, scratch_operands = 0 : i64, tpu.core_type = #tpu.core_type<tc>, window_params = [{transform_indices = @transform_0, window_bounds = array<i64: 8, 32>}, {transform_indices = @transform_1, window_bounds = array<i64: 8, 32>}, {pipeline_mode = #tpu.pipeline_mode<synchronous>, transform_indices = @transform_2, window_bounds = array<i64: 32, 128>}, {pipeline_mode = #tpu.pipeline_mode<synchronous>, transform_indices = @transform_3, window_bounds = array<i64: 1, 128>}, {transform_indices = @transform_4, window_bounds = array<i64: 8, 128>}]} {
    %c0 = arith.constant 0 : index
    %c0_0 = arith.constant 0 : index
    %0 = vector.load %arg1[%c0, %c0_0] : memref<8x32xf32, #tpu.memory_space<vmem>>, vector<8x32xf32>
    %c0_1 = arith.constant 0 : index
    %c0_2 = arith.constant 0 : index
    %1 = vector.load %arg2[%c0_1, %c0_2] : memref<8x32xbf16, #tpu.memory_space<vmem>>, vector<8x32xbf16>
    %2 = arith.extf %1 : vector<8x32xbf16> to vector<8x32xf32>
    %cst = arith.constant 1.11111116 : f32
    %3 = vector.broadcast %cst : f32 to vector<8x32xf32>
    %4 = arith.mulf %2, %3 : vector<8x32xf32>
    %5 = arith.mulf %0, %4 : vector<8x32xf32>
    %c0_3 = arith.constant 0 : index
    %c0_4 = arith.constant 0 : index
    %6 = vector.load %arg3[%c0_3, %c0_4] : memref<32x128xf32, #tpu.memory_space<vmem>>, vector<32x128xf32>
    %cst_5 = arith.constant dense<0.000000e+00> : vector<8x128xf32>
    %7 = tpu.matmul %5, %6, %cst_5 {dimension_numbers = #tpu.dot_dimension_numbers<[1], [0], [0], [1], [0, 0, 1, 1], [], []>} : vector<8x32xf32>, vector<32x128xf32>, vector<8x128xf32> -> vector<8x128xf32>
    %c0_6 = arith.constant 0 : index
    %c0_7 = arith.constant 0 : index
    %8 = vector.load %arg4[%c0_6, %c0_7] : memref<1x128xf32, #tpu.memory_space<vmem>>, vector<1x128xf32>
    %9 = vector.broadcast %8 : vector<1x128xf32> to vector<8x128xf32>
    %10 = arith.addf %7, %9 : vector<8x128xf32>
    %c0_8 = arith.constant 0 : index
    %c0_9 = arith.constant 0 : index
    %11 = vector.load %arg5[%c0_8, %c0_9] : memref<8x128xf32, #tpu.memory_space<vmem>>, vector<8x128xf32>
    tpu.vector_store %arg5[%c0_8, %c0_9], %10 {strides = array<i32>} : memref<8x128xf32, #tpu.memory_space<vmem>>, vector<8x128xf32>,
    return
  }
  func.func @transform_0(%arg0: i32) -> (i32, i32) {
    %c0_i32 = arith.constant 0 : i32
    %c0_i32_0 = arith.constant 0 : i32
    return %arg0, %c0_i32 : i32, i32
  }
  func.func @transform_1(%arg0: i32) -> (i32, i32) {
    %c0_i32 = arith.constant 0 : i32
    %c0_i32_0 = arith.constant 0 : i32
    return %arg0, %c0_i32 : i32, i32
  }
  func.func @transform_2(%arg0: i32) -> (i32, i32) {
    %c0_i32 = arith.constant 0 : i32
    %c0_i32_0 = arith.constant 0 : i32
    %c0_i32_1 = arith.constant 0 : i32
    return %c0_i32, %c0_i32_0 : i32, i32
  }
  func.func @transform_3(%arg0: i32) -> (i32, i32) {
    %c0_i32 = arith.constant 0 : i32
    %c0_i32_0 = arith.constant 0 : i32
    %c0_i32_1 = arith.constant 0 : i32
    return %c0_i32, %c0_i32_0 : i32, i32
  }
  func.func @transform_4(%arg0: i32) -> (i32, i32) {
    %c0_i32 = arith.constant 0 : i32
    %c0_i32_0 = arith.constant 0 : i32
    return %arg0, %c0_i32 : i32, i32
  }
}

</mosaic_0001>

<bundles_post_ra>
// kernel: tpu_custom_call.1
= control target key start
LH: loop header
LB: loop body
LE: loop exit
PB: predicated region body
PF: predicated region fallthrough
CT: control target
= control target key end

     0   :  { %12 = vsyncpa [#allocation5], 0  ;;  %s543_s0 = inlined_call_operand.<no memory space> [shape: s32[1], index: 0, kind: input, shape index: {}]   ;;  %s544_s1 = inlined_call_operand.hbm [shape: f32[8,32], index: 1, kind: input, shape index: {}]   ;;  %s545_s2 = inlined_call_operand.hbm [shape: f32[32,128], index: 2, kind: input, shape index: {}]   ;;  %s546_s3 = inlined_call_operand.vmem [shape: f32[1,128], index: 3, kind: input, shape index: {}]   ;;  %s547_s4 = inlined_call_operand.hbm [shape: f32[8,128], index: 4, kind: output, shape index: {0}]   ;;  %s548_s5 = inlined_call_operand.hbm [shape: f32[8,32], index: 5, kind: output, shape index: {1}]  }
   0x1   :  { %13 = vsyncpa [#allocation8], 0 }
   0x2   :  { %14 = vsyncpa [#allocation6], 0 }
   0x3   :  { %15 = vsyncpa [#allocation11], 0  ;;  %s424_s18 = smov [#allocation4]   ;;  %s425_s20 = smov [#allocation7]  }
   0x4   :  { %s22_s19 = sshll.u32 %s424_s18, 4  ;;  %s31_s21 = sshll.u32 %s425_s20, 4  ;;  %s23_s19 = int_to_ptr.vmem [resolvable:$true] %s22_s19  ;;  %s463_s21 = int_to_ptr.vmem [resolvable:$true] %s31_s21 }
   0x5   :  { %s328_s24 = scalar_lea.hbm %s544_s1, 128 }
   0x6   :  { %p329_p0 = scmp.ne.s32.totalorder %s544_s1, %s328_s24  ;;  %p332_p1 = scmp.lt.u32.totalorder %s328_s24, %s544_s1 }
   0x8   :  { %p334_p2 = pnand %p332_p1, %p329_p0 }
   0xa   :  { %337 = shalt.err (!%p334_p2)
}
   0xb   :  { %s338_s29 = scalar_lea.vmem %s23_s19, 128  ;;  %p343_p4 = scmp.lt.s32.totalorder %s23_s19, %s23_s19 }
   0xc   :  { %p339_p3 = scmp.ne.s32.totalorder %s23_s19, %s338_s29  ;;  %p344_p5 = scmp.lt.s32.totalorder %s338_s29, %s338_s29 }
   0xe   :  { %p345_p6 = por %p344_p5, %p343_p4 }
  0x10   :  { %p346_p7 = pnand %p345_p6, %p339_p3 }
  0x12   :  { %349 = shalt.err (!%p346_p7)
}
  0x13   :  { %25 = dma.hbm_to_vmem [thread:$0]  %s544_s1, 128, %s23_s19, [#allocation5]  }
  0x14   :  { %s350_s9 = scalar_lea.hbm %s545_s2, 512 }
  0x15   :  { %p351_p8 = scmp.ne.s32.totalorder %s545_s2, %s350_s9  ;;  %p354_p9 = scmp.lt.u32.totalorder %s350_s9, %s545_s2 }
  0x17   :  { %p356_p10 = pnand %p354_p9, %p351_p8 }
  0x19   :  { %359 = shalt.err (!%p356_p10)
}
  0x1a   :  { %s360_s14 = scalar_lea.vmem %s463_s21, 512  ;;  %p365_p12 = scmp.lt.s32.totalorder %s463_s21, %s463_s21 }
  0x1b   :  { %p361_p11 = scmp.ne.s32.totalorder %s463_s21, %s360_s14  ;;  %p366_p13 = scmp.lt.s32.totalorder %s360_s14, %s360_s14 }
  0x1d   :  { %p367_p0 = por %p366_p13, %p365_p12 }
  0x1f   :  { %p368_p1 = pnand %p367_p0, %p361_p11 }
  0x21   :  { %371 = shalt.err (!%p368_p1)
}
  0x22   :  { %s426_s1 = smov 128   ;;  %s427_s15 = smov 8  }
  0x23   :  { %37 = dma.hbm_to_vmem [thread:$0]  %s545_s2, 512, %s463_s21, [#allocation8], %s426_s1, %s426_s1, %s427_s15  }
  0x24   :  { %416 = dma.done.wait [#allocation5], 128  }
  0x25   :  { %417 = vsyncadd [#allocation5], 4294967168 }
  0x26   :  { %418 = dma.done.wait [#allocation8], 512  }
  0x27   :  { %419 = vsyncadd [#allocation8], 4294966784  ;;  %v48_v0 = vlaneseq  ;;  %v497_v1 = vstv %s543_s0  ;;  %v428_v2 = vmov 0.0|0.0   ;;  %v175_v8 = vld [vmem:[#allocation7] sm:$0xff]  ;;  %v176_v9 = vld [vmem:[#allocation7 + $0x8] sm:$0xff]  ;;  %vm429_vm0 = vmmov 0  }
  0x28   :  { %313 = vmatprep.subr.bf16.mxu0 %v428_v2  ;;  %v314_v10 = vpack.c.bf16 %v176_v9, %v175_v8  ;;  %v177_v20 = vld [vmem:[#allocation7 + $0x10] sm:$0xff]  ;;  %v178_v21 = vld [vmem:[#allocation7 + $0x18] sm:$0xff]  ;;  %v50_v24 = vxor.u32 %v497_v1, %v497_v1  ;;  %v430_v26 = vmov 0.0   ;;  %vm186_vm1 = vcmask 261120   ;;  %s431_s0 = smov [#allocation10]  }
  0x29   :  { %v52_v3 = vadd.s32 %v497_v1, %v48_v0  ;;  %v317_v22 = vpack.c.bf16 %v178_v21, %v177_v20  ;;  %310 = vmatprep.mubr.msk.f32.mxu0 %vm429_vm0, %v430_v26  ;;  %s280_s2 = sshll.u32 %s431_s0, 4  ;;  %s281_s2 = int_to_ptr.vmem [resolvable:$true] %s280_s2 }
  0x2a   :  { %315 = vmatpush3.bf16.msra.mxu0 %v314_v10  ;;  %v503_v30 = vxor.u32 466688986, %v50_v24  ;;  %s372_s20 = scalar_lea.vmem %s281_s2, 128  ;;  %p377_p3 = scmp.lt.s32.totalorder %s281_s2, %s281_s2 }
  0x2b   :  { %v53_v4 = vadd.s32 %v52_v3, %v52_v3  ;;  %v54_v5 = vshll.u32 %v52_v3, 13  ;;  %v55_v6 = vshrl.u32 %v52_v3, 19  ;;  %316 = vmatprep.subr.bf16.mxu0 %v428_v2  ;;  %p373_p2 = scmp.ne.s32.totalorder %s281_s2, %s372_s20  ;;  %p378_p4 = scmp.lt.s32.totalorder %s372_s20, %s372_s20 }
  0x2d   :  { %v56_v7 = vor.u32 %v55_v6, %v54_v5  ;;  %p379_p5 = por %p378_p4, %p377_p3 }
  0x2e   :  { %318 = vmatpush3.bf16.msra.mxu0 %v317_v22 }
  0x2f   :  { %v57_v11 = vxor.u32 %v56_v7, %v53_v4  ;;  %p380_p6 = pnand %p379_p5, %p373_p2 }
  0x31   :  { %v58_v12 = vadd.s32 %v57_v11, %v53_v4  ;;  %v59_v13 = vshll.u32 %v57_v11, 15  ;;  %v60_v14 = vshrl.u32 %v57_v11, 17 }
  0x33   :  { %v61_v15 = vor.u32 %v60_v14, %v59_v13 }
  0x35   :  { %v62_v16 = vxor.u32 %v61_v15, %v58_v12 }
  0x37   :  { %v63_v17 = vadd.s32 %v62_v16, %v58_v12  ;;  %v64_v18 = vshll.u32 %v62_v16, 26  ;;  %v65_v19 = vshrl.u32 %v62_v16, 6 }
  0x39   :  { %v66_v23 = vor.u32 %v65_v19, %v64_v18 }
  0x3b   :  { %v67_v25 = vxor.u32 %v66_v23, %v63_v17 }
  0x3d   :  { %v68_v27 = vadd.s32 %v67_v25, %v63_v17  ;;  %v69_v28 = vshll.u32 %v67_v25, 6  ;;  %v70_v29 = vshrl.u32 %v67_v25, 26 }
  0x3f   :  { %v71_v31 = vor.u32 %v70_v29, %v69_v28  ;;  %v73_v33 = vadd.s32 %v68_v27, %v497_v1 }
  0x41   :  { %v72_v32 = vxor.u32 %v71_v31, %v68_v27 }
  0x43   :  { %v74_v34 = vadd.s32 %v72_v32, %v503_v30 }
  0x45   :  { %v75_v35 = vadd.s32 1, %v74_v34 }
  0x47   :  { %v76_v36 = vadd.s32 %v75_v35, %v73_v33  ;;  %v77_v37 = vshll.u32 %v75_v35, 17  ;;  %v78_v38 = vshrl.u32 %v75_v35, 15 }
  0x49   :  { %v79_v39 = vor.u32 %v78_v38, %v77_v37 }
  0x4b   :  { %v80_v40 = vxor.u32 %v79_v39, %v76_v36 }
  0x4d   :  { %v81_v41 = vadd.s32 %v80_v40, %v76_v36  ;;  %v82_v42 = vshll.u32 %v80_v40, 29  ;;  %v83_v43 = vshrl.u32 %v80_v40, 3 }
  0x4f   :  { %v84_v44 = vor.u32 %v83_v43, %v82_v42 }
  0x51   :  { %v85_v45 = vxor.u32 %v84_v44, %v81_v41 }
  0x53   :  { %v86_v46 = vadd.s32 %v85_v45, %v81_v41  ;;  %v87_v47 = vshll.u32 %v85_v45, 16  ;;  %v88_v48 = vshrl.u32 %v85_v45, 16 }
  0x55   :  { %v89_v49 = vor.u32 %v88_v48, %v87_v47 }
  0x57   :  { %v90_v50 = vxor.u32 %v89_v49, %v86_v46 }
  0x59   :  { %v91_v51 = vadd.s32 %v90_v50, %v86_v46  ;;  %v92_v52 = vshll.u32 %v90_v50, 24  ;;  %v93_v53 = vshrl.u32 %v90_v50, 8 }
  0x5b   :  { %v94_v54 = vor.u32 %v93_v53, %v92_v52  ;;  %v96_v56 = vadd.s32 %v91_v51, %v503_v30 }
  0x5d   :  { %v95_v55 = vxor.u32 %v94_v54, %v91_v51 }
  0x5f   :  { %v97_v57 = vadd.s32 %v95_v55, %v497_v1 }
  0x61   :  { %v98_v58 = vadd.s32 2, %v97_v57 }
  0x63   :  { %v99_v59 = vadd.s32 %v98_v58, %v96_v56  ;;  %v100_v60 = vshll.u32 %v98_v58, 13  ;;  %v101_v61 = vshrl.u32 %v98_v58, 19 }
  0x65   :  { %v102_v62 = vor.u32 %v101_v61, %v100_v60 }
  0x67   :  { %v103_v63 = vxor.u32 %v102_v62, %v99_v59 }
  0x69   :  { %v104_v0 = vadd.s32 %v103_v63, %v99_v59  ;;  %v105_v2 = vshll.u32 %v103_v63, 15  ;;  %v106_v3 = vshrl.u32 %v103_v63, 17 }
  0x6b   :  { %v107_v4 = vor.u32 %v106_v3, %v105_v2 }
  0x6d   :  { %v108_v5 = vxor.u32 %v107_v4, %v104_v0  ;;  %v172_v4 = vld [vmem:[#allocation4] sm:$0xff] }
  0x6f   :  { %v109_v6 = vadd.s32 %v108_v5, %v104_v0  ;;  %v110_v7 = vshll.u32 %v108_v5, 26  ;;  %v111_v8 = vshrl.u32 %v108_v5, 6 }
  0x71   :  { %v112_v9 = vor.u32 %v111_v8, %v110_v7 }
  0x73   :  { %v113_v10 = vxor.u32 %v112_v9, %v109_v6 }
  0x75   :  { %v114_v11 = vadd.s32 %v113_v10, %v109_v6  ;;  %v115_v12 = vshll.u32 %v113_v10, 6  ;;  %v116_v13 = vshrl.u32 %v113_v10, 26  ;;  %v173_v6 = vmul.f32 1.1111112, %v172_v4 }
  0x77   :  { %v117_v14 = vor.u32 %v116_v13, %v115_v12  ;;  %v119_v16 = vadd.s32 %v114_v11, %v497_v1 }
  0x79   :  { %v118_v15 = vxor.u32 %v117_v14, %v114_v11 }
  0x7b   :  { %v120_v17 = vadd.s32 %v118_v15, %v497_v1 }
  0x7d   :  { %v121_v18 = vadd.s32 3, %v120_v17 }
  0x7f   :  { %v122_v19 = vadd.s32 %v121_v18, %v119_v16  ;;  %v123_v20 = vshll.u32 %v121_v18, 17  ;;  %v124_v21 = vshrl.u32 %v121_v18, 15 }
  0x81   :  { %v125_v22 = vor.u32 %v124_v21, %v123_v20 }
  0x83   :  { %v126_v23 = vxor.u32 %v125_v22, %v122_v19 }
  0x85   :  { %v127_v24 = vadd.s32 %v126_v23, %v122_v19  ;;  %v128_v25 = vshll.u32 %v126_v23, 29  ;;  %v129_v27 = vshrl.u32 %v126_v23, 3 }
  0x87   :  { %v130_v28 = vor.u32 %v129_v27, %v128_v25 }
  0x89   :  { %v131_v29 = vxor.u32 %v130_v28, %v127_v24 }
  0x8b   :  { %v132_v31 = vadd.s32 %v131_v29, %v127_v24  ;;  %v133_v32 = vshll.u32 %v131_v29, 16  ;;  %v134_v33 = vshrl.u32 %v131_v29, 16 }
  0x8d   :  { %v135_v34 = vor.u32 %v134_v33, %v133_v32 }
  0x8f   :  { %v136_v35 = vxor.u32 %v135_v34, %v132_v31 }
  0x91   :  { %v137_v36 = vadd.s32 %v136_v35, %v132_v31  ;;  %v138_v37 = vshll.u32 %v136_v35, 24  ;;  %v139_v38 = vshrl.u32 %v136_v35, 8 }
  0x93   :  { %v140_v39 = vor.u32 %v139_v38, %v138_v37  ;;  %v142_v41 = vadd.s32 %v137_v36, %v497_v1 }
  0x95   :  { %v141_v40 = vxor.u32 %v140_v39, %v137_v36 }
  0x97   :  { %v143_v42 = vadd.s32 %v141_v40, %v503_v30 }
  0x99   :  { %v144_v43 = vadd.s32 4, %v143_v42 }
  0x9b   :  { %v145_v44 = vadd.s32 %v144_v43, %v142_v41  ;;  %v146_v45 = vshll.u32 %v144_v43, 13  ;;  %v147_v46 = vshrl.u32 %v144_v43, 19 }
  0x9d   :  { %v148_v47 = vor.u32 %v147_v46, %v146_v45 }
  0x9f   :  { %v149_v48 = vxor.u32 %v148_v47, %v145_v44 }
  0xa1   :  { %v150_v49 = vadd.s32 %v149_v48, %v145_v44  ;;  %v151_v50 = vshll.u32 %v149_v48, 15  ;;  %v152_v51 = vshrl.u32 %v149_v48, 17 }
  0xa3   :  { %v153_v52 = vor.u32 %v152_v51, %v151_v50 }
  0xa5   :  { %v154_v53 = vxor.u32 %v153_v52, %v150_v49 }
  0xa7   :  { %v155_v54 = vadd.s32 %v154_v53, %v150_v49  ;;  %v156_v55 = vshll.u32 %v154_v53, 26  ;;  %v157_v56 = vshrl.u32 %v154_v53, 6 }
  0xa9   :  { %v158_v57 = vor.u32 %v157_v56, %v156_v55 }
  0xab   :  { %v159_v58 = vxor.u32 %v158_v57, %v155_v54 }
  0xad   :  { %v160_v59 = vadd.s32 %v159_v58, %v155_v54  ;;  %v161_v60 = vshll.u32 %v159_v58, 6  ;;  %v162_v61 = vshrl.u32 %v159_v58, 26 }
  0xaf   :  { %v163_v62 = vor.u32 %v162_v61, %v161_v60  ;;  %v165_v0 = vadd.s32 %v160_v59, %v503_v30 }
  0xb1   :  { %v164_v63 = vxor.u32 %v163_v62, %v160_v59 }
  0xb3   :  { %v166_v2 = vadd.s32 %v164_v63, %v497_v1 }
  0xb5   :  { %v167_v3 = vadd.s32 5, %v166_v2 }
  0xb7   :  { %v168_v5 = vxor.u32 %v167_v3, %v165_v0 }
  0xb9   :  { %169 = set.rngseed %v168_v5 }
  0xba   :  { %v170_v7 = vrng }
  0xbb   :  { %vm171_vm2 = vcmp.ge.s32.totalorder %v170_v7, 2576980378 }
  0xbc   :  { %v174_v8 = vsel %vm171_vm2, %v173_v6, 0.0  ;;  %v296_v9 = vsel %vm171_vm2, 1.0, %v430_v26 }
  0xbd   :  { %311 = vmatmul.mubr.msk.f32.vlgmr.msra.gmra.mrb[0].mxu0 %vm186_vm1, %v174_v8  ;;  %263 = vst.msk [vmem:[#allocation10] sm:$0xff] %vm186_vm1, %v296_v9 }
  0xbe   :  { %383 = shalt.err (!%p380_p6)
}
  0xbf   :  { %s384_s23 = scalar_lea.hbm %s548_s5, 128 }
  0xc0   :  { %p385_p7 = scmp.ne.s32.totalorder %s548_s5, %s384_s23  ;;  %p388_p8 = scmp.lt.u32.totalorder %s384_s23, %s548_s5 }
  0xc2   :  { %p390_p9 = pnand %p388_p8, %p385_p7 }
  0xc4   :  { %393 = shalt.err (!%p390_p9)
}
  0xc5   :  { %283 = dma.vmem_to_hbm [thread:$0]  %s281_s2, 128, %s548_s5, [#allocation11]   ;;  %v294_v1 = vld [vmem:[%s546_s3] ss:$0 sm:$0xff] }
  0xc6   :  { %s432_s7 = smov [#allocation9]  }
  0xc7   :  { %s270_s8 = sshll.u32 %s432_s7, 4  ;;  %s271_s8 = int_to_ptr.vmem [resolvable:$true] %s270_s8 }
  0xc8   :  { %s394_s9 = scalar_lea.vmem %s271_s8, 128  ;;  %p399_p11 = scmp.lt.s32.totalorder %s271_s8, %s271_s8 }
  0xc9   :  { %p395_p10 = scmp.ne.s32.totalorder %s271_s8, %s394_s9  ;;  %p400_p12 = scmp.lt.s32.totalorder %s394_s9, %s394_s9 }
  0xcb   :  { %p401_p13 = por %p400_p12, %p399_p11 }
  0xcd   :  { %p402_p0 = pnand %p401_p13, %p395_p10 }
 0x190   :  { %v256_v26 = vpop.f32.mrb[0].mxu0 }
 0x191   :  { %v257_v30 = vadd.f32 %v294_v1, %v256_v26  ;;  %v312_v10 = vpop.f32.mrb[1].mxu0 }
 0x193   :  { %260 = vst [vmem:[#allocation9] sm:$0xff] %v257_v30 }
 0x194   :  { %405 = shalt.err (!%p402_p0)
}
 0x195   :  { %s406_s11 = scalar_lea.hbm %s547_s4, 128 }
 0x196   :  { %p407_p1 = scmp.ne.s32.totalorder %s547_s4, %s406_s11  ;;  %p410_p2 = scmp.lt.u32.totalorder %s406_s11, %s547_s4 }
 0x198   :  { %p412_p3 = pnand %p410_p2, %p407_p1 }
 0x19a   :  { %415 = shalt.err (!%p412_p3)
}
 0x19b   :  { %273 = dma.vmem_to_hbm [thread:$0]  %s271_s8, 128, %s547_s4, [#allocation6]  }
 0x19c   :  { %420 = dma.done.wait [#allocation6], 128  }
 0x19d   :  { %421 = vsyncadd [#allocation6], 4294967168 }
 0x19e   :  { %422 = dma.done.wait [#allocation11], 128  }
 0x19f   :  { %423 = vsyncadd [#allocation11], 4294967168 }
 0x1a0   :  { %290 = vsyncpa [#allocation5], 1 }
 0x1a1   :  { %291 = vsyncpa [#allocation8], 1 }
 0x1a2   :  { %292 = vsyncpa [#allocation6], 1 }
 0x1a3   :  { %293 = vsyncpa [#allocation11], 1 }

// kernel: tpu_custom_call.1
= control target key start
LH: loop header
LB: loop body
LE: loop exit
PB: predicated region body
PF: predicated region fallthrough
CT: control target
= control target key end

     0   :  { %9 = vsyncpa [#allocation3], 0  ;;  %s374_s0 = inlined_call_operand.hbm [shape: f32[8,32], index: 0, kind: input, shape index: {}]   ;;  %s375_s1 = inlined_call_operand.hbm [shape: bf16[8,32], index: 1, kind: input, shape index: {}]   ;;  %s376_s2 = inlined_call_operand.hbm [shape: f32[32,128], index: 2, kind: input, shape index: {}]   ;;  %s377_s3 = inlined_call_operand.vmem [shape: f32[1,128], index: 3, kind: input, shape index: {}]   ;;  %s378_s4 = inlined_call_operand.hbm [shape: f32[8,128], index: 4, kind: output, shape index: {}]  }
   0x1   :  { %10 = vsyncpa [#allocation6], 0 }
   0x2   :  { %11 = vsyncpa [#allocation4], 0  ;;  %s289_s15 = smov [#allocation5]   ;;  %s290_s17 = smov [#allocation2]  }
   0x3   :  { %s28_s16 = sshll.u32 %s289_s15, 4  ;;  %s18_s18 = sshll.u32 %s290_s17, 4  ;;  %s29_s16 = int_to_ptr.vmem [resolvable:$true] %s28_s16  ;;  %s19_s18 = int_to_ptr.vmem [resolvable:$true] %s18_s18 }
   0x4   :  { %s195_s21 = scalar_lea.hbm %s375_s1, 64 }
   0x5   :  { %p196_p0 = scmp.ne.s32.totalorder %s375_s1, %s195_s21  ;;  %p199_p1 = scmp.lt.u32.totalorder %s195_s21, %s375_s1 }
   0x7   :  { %p201_p2 = pnand %p199_p1, %p196_p0 }
   0x9   :  { %204 = shalt.err (!%p201_p2)
}
   0xa   :  { %s205_s26 = scalar_lea.vmem %s29_s16, 64  ;;  %p210_p4 = scmp.lt.s32.totalorder %s29_s16, %s29_s16 }
   0xb   :  { %p206_p3 = scmp.ne.s32.totalorder %s29_s16, %s205_s26  ;;  %p211_p5 = scmp.lt.s32.totalorder %s205_s26, %s205_s26 }
   0xd   :  { %p212_p6 = por %p211_p5, %p210_p4 }
   0xf   :  { %p213_p7 = pnand %p212_p6, %p206_p3 }
  0x11   :  { %216 = shalt.err (!%p213_p7)
}
  0x12   :  { %31 = dma.hbm_to_vmem [thread:$0]  %s375_s1, 64, %s29_s16, [#allocation6]  }
  0x13   :  { %s217_s5 = scalar_lea.hbm %s374_s0, 128 }
  0x14   :  { %p218_p8 = scmp.ne.s32.totalorder %s374_s0, %s217_s5  ;;  %p221_p9 = scmp.lt.u32.totalorder %s217_s5, %s374_s0 }
  0x16   :  { %p223_p10 = pnand %p221_p9, %p218_p8 }
  0x18   :  { %226 = shalt.err (!%p223_p10)
}
  0x19   :  { %s227_s10 = scalar_lea.vmem %s19_s18, 128  ;;  %p232_p12 = scmp.lt.s32.totalorder %s19_s18, %s19_s18 }
  0x1a   :  { %p228_p11 = scmp.ne.s32.totalorder %s19_s18, %s227_s10  ;;  %p233_p13 = scmp.lt.s32.totalorder %s227_s10, %s227_s10 }
  0x1c   :  { %p234_p0 = por %p233_p13, %p232_p12 }
  0x1e   :  { %p235_p1 = pnand %p234_p0, %p228_p11 }
  0x20   :  { %238 = shalt.err (!%p235_p1)
}
  0x21   :  { %21 = dma.hbm_to_vmem [thread:$0]  %s374_s0, 128, %s19_s18, [#allocation3]  }
  0x22   :  { %s291_s12 = smov [#allocation7]   ;;  %s239_s16 = scalar_lea.hbm %s376_s2, 512 }
  0x23   :  { %s37_s13 = sshll.u32 %s291_s12, 4  ;;  %p240_p2 = scmp.ne.s32.totalorder %s376_s2, %s239_s16  ;;  %s38_s13 = int_to_ptr.vmem [resolvable:$true] %s37_s13 }
  0x24   :  { %p243_p3 = scmp.lt.u32.totalorder %s239_s16, %s376_s2 }
  0x26   :  { %p245_p4 = pnand %p243_p3, %p240_p2 }
  0x28   :  { %248 = shalt.err (!%p245_p4)
}
  0x29   :  { %s249_s22 = scalar_lea.vmem %s38_s13, 512  ;;  %p254_p6 = scmp.lt.s32.totalorder %s38_s13, %s38_s13 }
  0x2a   :  { %p250_p5 = scmp.ne.s32.totalorder %s38_s13, %s249_s22  ;;  %p255_p7 = scmp.lt.s32.totalorder %s249_s22, %s249_s22 }
  0x2c   :  { %p256_p8 = por %p255_p7, %p254_p6 }
  0x2e   :  { %p257_p9 = pnand %p256_p8, %p250_p5 }
  0x30   :  { %260 = shalt.err (!%p257_p9)
}
  0x31   :  { %s292_s0 = smov 128   ;;  %s293_s18 = smov 8  }
  0x32   :  { %43 = dma.hbm_to_vmem [thread:$0]  %s376_s2, 512, %s38_s13, [#allocation6], %s292_s0, %s292_s0, %s293_s18  }
  0x33   :  { %283 = dma.done.wait [#allocation3], 128  }
  0x34   :  { %284 = vsyncadd [#allocation3], 4294967168 }
  0x35   :  { %285 = dma.done.wait [#allocation6], 576  }
  0x36   :  { %286 = vsyncadd [#allocation6], 4294966720  ;;  %v294_v0 = vmov 0.0|0.0   ;;  %vm295_vm0 = vmmov 0   ;;  %v296_v1 = vmov 0.0   ;;  %v60_v2 = vld [vmem:[#allocation7] sm:$0xff] }
  0x37   :  { %180 = vmatprep.subr.bf16.mxu0 %v294_v0  ;;  %177 = vmatprep.mubr.msk.f32.mxu0 %vm295_vm0, %v296_v1  ;;  %v61_v3 = vld [vmem:[#allocation7 + $0x8] sm:$0xff]  ;;  %v62_v4 = vld [vmem:[#allocation7 + $0x10] sm:$0xff]  ;;  %v63_v6 = vld [vmem:[#allocation7 + $0x18] sm:$0xff]  ;;  %vm71_vm1 = vcmask 261120   ;;  %s297_s26 = smov [#allocation8]  }
  0x38   :  { %v181_v5 = vpack.c.bf16 %v61_v3, %v60_v2  ;;  %v56_v7 = vld [vmem:[#allocation5] sm:$0xf]  ;;  %v184_v9 = vpack.c.bf16 %v63_v6, %v62_v4  ;;  %v55_v10 = vld [vmem:[#allocation2] sm:$0xff]  ;;  %s152_s27 = sshll.u32 %s297_s26, 4  ;;  %s153_s27 = int_to_ptr.vmem [resolvable:$true] %s152_s27 }
  0x39   :  { %v57_v8 = vunpack.c.l.bf16 %v56_v7  ;;  %v162_v13 = vld [vmem:[%s377_s3] ss:$0 sm:$0xff]  ;;  %s261_s28 = scalar_lea.vmem %s153_s27, 128  ;;  %p266_p11 = scmp.lt.s32.totalorder %s153_s27, %s153_s27 }
  0x3a   :  { %182 = vmatpush3.bf16.msra.mxu0 %v181_v5  ;;  %p262_p10 = scmp.ne.s32.totalorder %s153_s27, %s261_s28  ;;  %p267_p12 = scmp.lt.s32.totalorder %s261_s28, %s261_s28 }
  0x3b   :  { %183 = vmatprep.subr.bf16.mxu0 %v294_v0  ;;  %v58_v11 = vmul.f32 1.1111112, %v57_v8 }
  0x3c   :  { %p268_p13 = por %p267_p12, %p266_p11 }
  0x3d   :  { %v59_v12 = vmul.f32 %v58_v11, %v55_v10 }
  0x3e   :  { %185 = vmatpush3.bf16.msra.mxu0 %v184_v9  ;;  %p269_p0 = pnand %p268_p13, %p262_p10 }
  0x41   :  { %178 = vmatmul.mubr.msk.f32.vlgmr.msra.gmra.mrb[0].mxu0 %vm71_vm1, %v59_v12 }
 0x114   :  { %v141_v14 = vpop.f32.mrb[0].mxu0 }
 0x115   :  { %v142_v15 = vadd.f32 %v162_v13, %v141_v14  ;;  %v179_v16 = vpop.f32.mrb[1].mxu0 }
 0x117   :  { %145 = vst [vmem:[#allocation8] sm:$0xff] %v142_v15 }
 0x118   :  { %272 = shalt.err (!%p269_p0)
}
 0x119   :  { %s273_s5 = scalar_lea.hbm %s378_s4, 128 }
 0x11a   :  { %p274_p1 = scmp.ne.s32.totalorder %s378_s4, %s273_s5  ;;  %p277_p2 = scmp.lt.u32.totalorder %s273_s5, %s378_s4 }
 0x11c   :  { %p279_p3 = pnand %p277_p2, %p274_p1 }
 0x11e   :  { %282 = shalt.err (!%p279_p3)
}
 0x11f   :  { %155 = dma.vmem_to_hbm [thread:$0]  %s153_s27, 128, %s378_s4, [#allocation4]  }
 0x120   :  { %287 = dma.done.wait [#allocation4], 128  }
 0x121   :  { %288 = vsyncadd [#allocation4], 4294967168 }
 0x122   :  { %159 = vsyncpa [#allocation3], 1 }
 0x123   :  { %160 = vsyncpa [#allocation6], 1 }
 0x124   :  { %161 = vsyncpa [#allocation4], 1 }

</bundles_post_ra>
